<compile_context>
chip_gen: v7x
topology: tpu7x:2x2x1
jax: 0.10.0
libtpu: 0.0.40
codegen_flags: <defaults>
</compile_context>

<pallas_src>
import math

import jax
import jax.numpy as jnp
from jax.experimental import pallas as pl
from jax.experimental.pallas import tpu as pltpu


def _round_up(x, m):
    return (x + m - 1) // m * m


# TODO(synk): PyTorch nn.GELU default is erf-exact; we use the tanh approximation
# (EUP tanh path) which differs by ~1e-3 in nonlinear regions.
def _gelu(x):
    return jax.nn.gelu(x, approximate=True)


# ---------------------------------------------------------------------------
# Kernel
# ---------------------------------------------------------------------------
def _make_kernel(num_layers, dout, dout_pad, compute_dtype):
    def kernel(x_ref, w0_ref, wrest_ref, bt_ref, w1_ref, b1_ref,
               w2_ref, b2_ref, o_ref):
        x = x_ref[...].astype(jnp.float32)                           # (TM, din_pad)

        # ---- trunk: num_layers x (Linear + GELU); weights resident in VMEM ----
        z = jnp.dot(x.astype(compute_dtype), w0_ref[...],
                    preferred_element_type=jnp.float32) + bt_ref[0]
        h = _gelu(z)
        for li in range(1, num_layers):
            z = jnp.dot(h.astype(compute_dtype), wrest_ref[li - 1],
                        preferred_element_type=jnp.float32) + bt_ref[li]
            h = _gelu(z)

        # ---- all heads fused: one wide (Linear+GELU), then one block-diagonal
        #      Linear producing a narrow (TM, dout_pad) slab, dout_pad = rnd8(dout) ----
        t = _gelu(jnp.dot(h.astype(compute_dtype), w1_ref[...],
                          preferred_element_type=jnp.float32) + b1_ref[...])
        o = jnp.dot(t.astype(compute_dtype), w2_ref[...],
                    preferred_element_type=jnp.float32) + b2_ref[...]

        # ---- residual: query values are the leading dout columns of x_cat; add
        #      them back with an exact-f32 VPU column mask (no matmul, no R array) ----
        resid = x[:, :dout_pad]                       # dout_pad <= din_pad always
        col = jax.lax.broadcasted_iota(jnp.int32, resid.shape, 1)
        resid = jnp.where(col < dout, resid, 0.0)     # zero the time_step / pad cols
        o_ref[...] = (o + resid).astype(o_ref.dtype)

    return kernel


# ---------------------------------------------------------------------------
# Parameters (synthetic, matching MLP_Predictor.__init__ shapes)
# ---------------------------------------------------------------------------
def init_params(key, query_keys, query_dims, latent_dim=32, num_layers=4):
    def linear(k, din, dout):
        kw, kb = jax.random.split(k)
        scale = 1.0 / math.sqrt(din)
        W = jax.random.uniform(kw, (din, dout), jnp.float32, -scale, scale)
        b = jax.random.uniform(kb, (1, dout), jnp.float32, -scale, scale)
        return W, b

    query_total_dim = sum(query_dims) + 1
    params = {"trunk": [], "heads": {}}

    n_linear = num_layers + 2 * len(query_keys)
    keys = jax.random.split(key, n_linear)
    ki = 0

    din = query_total_dim
    for _ in range(num_layers):
        params["trunk"].append(linear(keys[ki], din, latent_dim))
        ki += 1
        din = latent_dim

    half = latent_dim // 2
    for qk, qd in zip(query_keys, query_dims):
        l1 = linear(keys[ki], latent_dim, half)
        ki += 1
        l2 = linear(keys[ki], half, qd)
        ki += 1
        params["heads"][qk] = (l1, l2)
    return params


def pack_params(params, query_keys, query_dims, *, compute_dtype=jnp.bfloat16):
    """Pack all weights/biases into a small number of kernel-resident arrays."""
    trunk = params["trunk"]
    num_layers = len(trunk)
    latent = trunk[0][0].shape[1]
    half = params["heads"][query_keys[0]][0][0].shape[1]
    din = trunk[0][0].shape[0]                       # sum(query_dims) + 1
    dout = sum(query_dims)
    din_pad = _round_up(din, 8)                      # sublane-friendly feature width
    dout_pad = _round_up(dout, 8)                    # NOT 128: block last dim == array last dim

    # trunk: first weight (padded rows), remaining weights stacked 3-D, biases stacked
    w0 = jnp.zeros((din_pad, latent), jnp.float32).at[:din].set(trunk[0][0])
    if num_layers > 1:
        wrest = jnp.stack([w for (w, _) in trunk[1:]], axis=0)
    else:
        wrest = jnp.zeros((1, latent, latent), jnp.float32)
    bt = jnp.stack([b for (_, b) in trunk], axis=0)  # (num_layers, 1, latent)

    # heads: concatenated first-layer, block-diagonal second-layer
    w1 = jnp.concatenate([params["heads"][k][0][0] for k in query_keys], axis=1)
    b1 = jnp.concatenate([params["heads"][k][0][1] for k in query_keys], axis=1)
    w2 = jnp.zeros((len(query_keys) * half, dout_pad), jnp.float32)
    b2 = jnp.zeros((1, dout_pad), jnp.float32)
    col = 0
    for ki, (k, d) in enumerate(zip(query_keys, query_dims)):
        w2k, b2k = params["heads"][k][1]
        w2 = w2.at[ki * half:(ki + 1) * half, col:col + d].set(w2k)
        b2 = b2.at[:, col:col + d].set(b2k)
        col += d

    packed = {
        "w0": w0.astype(compute_dtype),
        "wrest": wrest.astype(compute_dtype),
        "bt": bt.astype(jnp.float32),
        "w1": w1.astype(compute_dtype),
        "b1": b1.astype(jnp.float32),
        "w2": w2.astype(compute_dtype),
        "b2": b2.astype(jnp.float32),
    }
    meta = dict(num_layers=num_layers, latent=latent, half=half,
                din=din, din_pad=din_pad, dout=dout, dout_pad=dout_pad,
                compute_dtype=compute_dtype)
    return packed, meta


# ---------------------------------------------------------------------------
# Forward wrapper
# ---------------------------------------------------------------------------
def _vmem_bytes(shape, dtype):
    """Conservative VMEM footprint of one buffer: lanes pad to 128, sublanes to 8."""
    itemsize = jnp.dtype(dtype).itemsize
    if len(shape) == 0:
        return 4
    lane = _round_up(int(shape[-1]), 128)
    sub = _round_up(int(shape[-2]), 8) if len(shape) >= 2 else 1
    lead = 1
    for s in shape[:-2]:
        lead *= int(s)
    return lead * sub * lane * itemsize


def mlp_predictor_forward(packed, meta, query, time_step, query_keys, query_dims,
                          *, tile_m=2048):
    """query: dict key -> (B, dim_k); time_step: (B, 1). Returns dict key -> (B, dim_k).

    tile_m=2048 is a good default on all generations; 4096 can help further on
    v6e/v7x for very large B (VMEM footprint stays <10 MiB either way).
    """
    B = time_step.shape[0]
    din, din_pad = meta["din"], meta["din_pad"]
    dout, dout_pad = meta["dout"], meta["dout_pad"]

    # torch.cat([query[k]..., time_step], dim=1), zero-padded to (b_pad, din_pad)
    x_cat = jnp.concatenate(
        [query[k].astype(jnp.float32) for k in query_keys]
        + [time_step.reshape(B, 1).astype(jnp.float32)], axis=1)

    # Batch tile: as large as requested, but capped so the grid has >= ~4 steps
    # (>= 2 per v7x TensorCore -> megacore sharding + double-buffered pipelining).
    b_round = _round_up(max(B, 1), 8)
    tm_cap = _round_up(pl.cdiv(b_round, 4), 8)
    tm = max(8, min(_round_up(tile_m, 8), b_round, tm_cap))
    b_pad = _round_up(B, tm)
    x_cat = jnp.pad(x_cat, ((0, b_pad - B), (0, din_pad - din)))

    kernel = _make_kernel(meta["num_layers"], dout, dout_pad, meta["compute_dtype"])

    inputs = [x_cat, packed["w0"], packed["wrest"], packed["bt"],
              packed["w1"], packed["b1"], packed["w2"], packed["b2"]]

    def resident(a):
        nd = a.ndim
        return pl.BlockSpec(a.shape, lambda i, _nd=nd: (0,) * _nd)

    in_specs = [pl.BlockSpec((tm, din_pad), lambda i: (i, 0))]
    in_specs += [resident(a) for a in inputs[1:]]
    out_spec = pl.BlockSpec((tm, dout_pad), lambda i: (i, 0))

    # VMEM budget: double-buffered batch/output tiles + resident params (all
    # lane/sublane padded) + slack; clamp well below physical VMEM (v7x: 64 MiB/TC).
    tile_bytes = 2 * (_vmem_bytes((tm, din_pad), jnp.float32)
                      + _vmem_bytes((tm, dout_pad), jnp.float32))
    param_bytes = sum(_vmem_bytes(a.shape, a.dtype) for a in inputs[1:])
    vmem_limit = int(min(max(tile_bytes + 2 * param_bytes + (4 << 20), 8 << 20),
                         48 << 20))

    out = pl.pallas_call(
        kernel,
        out_shape=jax.ShapeDtypeStruct((b_pad, dout_pad), jnp.float32),
        grid=(pl.cdiv(b_pad, tm),),
        in_specs=in_specs,
        out_specs=out_spec,
        compiler_params=pltpu.CompilerParams(
            dimension_semantics=("parallel",),
            vmem_limit_bytes=vmem_limit),
    )(*inputs)

    out = out[:B]
    result = {}
    col = 0
    for k, d in zip(query_keys, query_dims):
        result[k] = out[:, col:col + d].astype(query[k].dtype)
        col += d
    return result


# ---------------------------------------------------------------------------
# Pure-JAX reference
# ---------------------------------------------------------------------------
def _reference_forward(params, query, time_step, query_keys):
    B = time_step.shape[0]
    x = jnp.concatenate(
        [query[k].astype(jnp.float32) for k in query_keys]
        + [time_step.reshape(B, 1).astype(jnp.float32)], axis=1)
    h = x
    for w, b in params["trunk"]:
        h = _gelu(h @ w + b)
    out = {}
    for k in query_keys:
        (w1, b1), (w2, b2) = params["heads"][k]
        t = _gelu(h @ w1 + b1)
        out[k] = query[k] + (t @ w2 + b2)
    return out


if __name__ == "__main__":
    # Small toy configuration; keys sorted to match register_query_keys.sort().
    query_keys = sorted(["pos", "vel"])
    query_dims = [4, 3]
    latent_dim = 32
    num_layers = 4
    B = 50                       # exercises batch padding + a multi-step grid

    root = jax.random.PRNGKey(0)
    k_params, k_pos, k_vel, k_t = jax.random.split(root, 4)

    params = init_params(k_params, query_keys, query_dims, latent_dim, num_layers)
    query = {
        "pos": jax.random.normal(k_pos, (B, query_dims[0]), jnp.float32),
        "vel": jax.random.normal(k_vel, (B, query_dims[1]), jnp.float32),
    }
    time_step = jax.random.uniform(k_t, (B, 1), jnp.float32)

    ref = _reference_forward(params, query, time_step, query_keys)

    # f32 MXU path (tight check). tm is auto-capped to ~B/4 -> several grid steps.
    packed, meta = pack_params(params, query_keys, query_dims,
                               compute_dtype=jnp.float32)
    out = mlp_predictor_forward(packed, meta, query, time_step,
                                query_keys, query_dims)
    out = jax.block_until_ready(out)
    for k, d in zip(query_keys, query_dims):
        assert out[k].shape == (B, d)
        assert jnp.allclose(out[k], ref[k], atol=1e-4, rtol=1e-4), k

    # Default bf16 MXU-input path (f32 accumulation / element-wise), loose check.
    packed16, meta16 = pack_params(params, query_keys, query_dims)
    out16 = mlp_predictor_forward(packed16, meta16, query, time_step,
                                  query_keys, query_dims)
    out16 = jax.block_until_ready(out16)
    for k in query_keys:
        assert out16[k].shape == out[k].shape
        assert bool(jnp.all(jnp.isfinite(out16[k])))
        assert float(jnp.max(jnp.abs(out16[k] - ref[k]))) < 0.2, k

    print("KERNEL_OK")
</pallas_src>

<mosaic_0001>
module attributes {stable_mosaic.version = 11 : i64} {
  func.func @kernel(%arg0: i32, %arg1: memref<16x8xf32, #tpu.memory_space<vmem>>, %arg2: memref<8x32xf32, #tpu.memory_space<vmem>>, %arg3: memref<3x32x32xf32, #tpu.memory_space<vmem>>, %arg4: memref<4x1x32xf32, #tpu.memory_space<vmem>>, %arg5: memref<32x32xf32, #tpu.memory_space<vmem>>, %arg6: memref<1x32xf32, #tpu.memory_space<vmem>>, %arg7: memref<32x8xf32, #tpu.memory_space<vmem>>, %arg8: memref<1x8xf32, #tpu.memory_space<vmem>>, %arg9: memref<16x8xf32, #tpu.memory_space<vmem>>) attributes {dimension_semantics = [#tpu.dimension_semantics<parallel>], iteration_bounds = array<i64: 4>, scalar_prefetch = 0 : i64, scratch_operands = 0 : i64, tpu.core_type = #tpu.core_type<tc>, window_params = [{transform_indices = @transform_0, window_bounds = array<i64: 16, 8>}, {pipeline_mode = #tpu.pipeline_mode<synchronous>, transform_indices = @transform_1, window_bounds = array<i64: 8, 32>}, {pipeline_mode = #tpu.pipeline_mode<synchronous>, transform_indices = @transform_2, window_bounds = array<i64: 3, 32, 32>}, {pipeline_mode = #tpu.pipeline_mode<synchronous>, transform_indices = @transform_3, window_bounds = array<i64: 4, 1, 32>}, {pipeline_mode = #tpu.pipeline_mode<synchronous>, transform_indices = @transform_4, window_bounds = array<i64: 32, 32>}, {pipeline_mode = #tpu.pipeline_mode<synchronous>, transform_indices = @transform_5, window_bounds = array<i64: 1, 32>}, {pipeline_mode = #tpu.pipeline_mode<synchronous>, transform_indices = @transform_6, window_bounds = array<i64: 32, 8>}, {pipeline_mode = #tpu.pipeline_mode<synchronous>, transform_indices = @transform_7, window_bounds = array<i64: 1, 8>}, {transform_indices = @transform_8, window_bounds = array<i64: 16, 8>}]} {
    %c0 = arith.constant 0 : index
    %c0_0 = arith.constant 0 : index
    %0 = vector.load %arg1[%c0, %c0_0] : memref<16x8xf32, #tpu.memory_space<vmem>>, vector<16x8xf32>
    %c0_1 = arith.constant 0 : index
    %c0_2 = arith.constant 0 : index
    %1 = vector.load %arg2[%c0_1, %c0_2] : memref<8x32xf32, #tpu.memory_space<vmem>>, vector<8x32xf32>
    %cst = arith.constant dense<0.000000e+00> : vector<16x32xf32>
    %2 = tpu.matmul %0, %1, %cst {dimension_numbers = #tpu.dot_dimension_numbers<[1], [0], [0], [1], [0, 0, 1, 1], [], []>} : vector<16x8xf32>, vector<8x32xf32>, vector<16x32xf32> -> vector<16x32xf32>
    %c0_3 = arith.constant 0 : index
    %c0_4 = arith.constant 0 : index
    %c0_5 = arith.constant 0 : index
    %3 = vector.load %arg4[%c0_3, %c0_4, %c0_5] : memref<4x1x32xf32, #tpu.memory_space<vmem>>, vector<1x1x32xf32>
    %4 = vector.shape_cast %3 : vector<1x1x32xf32> to vector<1x32xf32>
    %5 = vector.broadcast %4 : vector<1x32xf32> to vector<16x32xf32>
    %6 = arith.addf %2, %5 : vector<16x32xf32>
    %7 = arith.mulf %6, %6 : vector<16x32xf32>
    %8 = arith.mulf %6, %7 : vector<16x32xf32>
    %cst_6 = arith.constant 4.471500e-02 : f32
    %9 = vector.broadcast %cst_6 : f32 to vector<16x32xf32>
    %10 = arith.mulf %9, %8 : vector<16x32xf32>
    %11 = arith.addf %6, %10 : vector<16x32xf32>
    %cst_7 = arith.constant 0.797884583 : f32
    %12 = vector.broadcast %cst_7 : f32 to vector<16x32xf32>
    %13 = arith.mulf %12, %11 : vector<16x32xf32>
    %14 = math.tanh %13 : vector<16x32xf32>
    %cst_8 = arith.constant 1.000000e+00 : f32
    %15 = vector.broadcast %cst_8 : f32 to vector<16x32xf32>
    %16 = arith.addf %15, %14 : vector<16x32xf32>
    %cst_9 = arith.constant 5.000000e-01 : f32
    %17 = vector.broadcast %cst_9 : f32 to vector<16x32xf32>
    %18 = arith.mulf %17, %16 : vector<16x32xf32>
    %19 = arith.mulf %6, %18 : vector<16x32xf32>
    %c0_10 = arith.constant 0 : index
    %c0_11 = arith.constant 0 : index
    %c0_12 = arith.constant 0 : index
    %20 = vector.load %arg3[%c0_10, %c0_11, %c0_12] : memref<3x32x32xf32, #tpu.memory_space<vmem>>, vector<1x32x32xf32>
    %21 = vector.shape_cast %20 : vector<1x32x32xf32> to vector<32x32xf32>
    %cst_13 = arith.constant dense<0.000000e+00> : vector<16x32xf32>
    %22 = tpu.matmul %19, %21, %cst_13 {dimension_numbers = #tpu.dot_dimension_numbers<[1], [0], [0], [1], [0, 0, 1, 1], [], []>} : vector<16x32xf32>, vector<32x32xf32>, vector<16x32xf32> -> vector<16x32xf32>
    %c1 = arith.constant 1 : index
    %c0_14 = arith.constant 0 : index
    %c0_15 = arith.constant 0 : index
    %23 = vector.load %arg4[%c1, %c0_14, %c0_15] : memref<4x1x32xf32, #tpu.memory_space<vmem>>, vector<1x1x32xf32>
    %24 = vector.shape_cast %23 : vector<1x1x32xf32> to vector<1x32xf32>
    %25 = vector.broadcast %24 : vector<1x32xf32> to vector<16x32xf32>
    %26 = arith.addf %22, %25 : vector<16x32xf32>
    %27 = arith.mulf %26, %26 : vector<16x32xf32>
    %28 = arith.mulf %26, %27 : vector<16x32xf32>
    %cst_16 = arith.constant 4.471500e-02 : f32
    %29 = vector.broadcast %cst_16 : f32 to vector<16x32xf32>
    %30 = arith.mulf %29, %28 : vector<16x32xf32>
    %31 = arith.addf %26, %30 : vector<16x32xf32>
    %cst_17 = arith.constant 0.797884583 : f32
    %32 = vector.broadcast %cst_17 : f32 to vector<16x32xf32>
    %33 = arith.mulf %32, %31 : vector<16x32xf32>
    %34 = math.tanh %33 : vector<16x32xf32>
    %cst_18 = arith.constant 1.000000e+00 : f32
    %35 = vector.broadcast %cst_18 : f32 to vector<16x32xf32>
    %36 = arith.addf %35, %34 : vector<16x32xf32>
    %cst_19 = arith.constant 5.000000e-01 : f32
    %37 = vector.broadcast %cst_19 : f32 to vector<16x32xf32>
    %38 = arith.mulf %37, %36 : vector<16x32xf32>
    %39 = arith.mulf %26, %38 : vector<16x32xf32>
    %c1_20 = arith.constant 1 : index
    %c0_21 = arith.constant 0 : index
    %c0_22 = arith.constant 0 : index
    %40 = vector.load %arg3[%c1_20, %c0_21, %c0_22] : memref<3x32x32xf32, #tpu.memory_space<vmem>>, vector<1x32x32xf32>
    %41 = vector.shape_cast %40 : vector<1x32x32xf32> to vector<32x32xf32>
    %cst_23 = arith.constant dense<0.000000e+00> : vector<16x32xf32>
    %42 = tpu.matmul %39, %41, %cst_23 {dimension_numbers = #tpu.dot_dimension_numbers<[1], [0], [0], [1], [0, 0, 1, 1], [], []>} : vector<16x32xf32>, vector<32x32xf32>, vector<16x32xf32> -> vector<16x32xf32>
    %c2 = arith.constant 2 : index
    %c0_24 = arith.constant 0 : index
    %c0_25 = arith.constant 0 : index
    %43 = vector.load %arg4[%c2, %c0_24, %c0_25] : memref<4x1x32xf32, #tpu.memory_space<vmem>>, vector<1x1x32xf32>
    %44 = vector.shape_cast %43 : vector<1x1x32xf32> to vector<1x32xf32>
    %45 = vector.broadcast %44 : vector<1x32xf32> to vector<16x32xf32>
    %46 = arith.addf %42, %45 : vector<16x32xf32>
    %47 = arith.mulf %46, %46 : vector<16x32xf32>
    %48 = arith.mulf %46, %47 : vector<16x32xf32>
    %cst_26 = arith.constant 4.471500e-02 : f32
    %49 = vector.broadcast %cst_26 : f32 to vector<16x32xf32>
    %50 = arith.mulf %49, %48 : vector<16x32xf32>
    %51 = arith.addf %46, %50 : vector<16x32xf32>
    %cst_27 = arith.constant 0.797884583 : f32
    %52 = vector.broadcast %cst_27 : f32 to vector<16x32xf32>
    %53 = arith.mulf %52, %51 : vector<16x32xf32>
    %54 = math.tanh %53 : vector<16x32xf32>
    %cst_28 = arith.constant 1.000000e+00 : f32
    %55 = vector.broadcast %cst_28 : f32 to vector<16x32xf32>
    %56 = arith.addf %55, %54 : vector<16x32xf32>
    %cst_29 = arith.constant 5.000000e-01 : f32
    %57 = vector.broadcast %cst_29 : f32 to vector<16x32xf32>
    %58 = arith.mulf %57, %56 : vector<16x32xf32>
    %59 = arith.mulf %46, %58 : vector<16x32xf32>
    %c2_30 = arith.constant 2 : index
    %c0_31 = arith.constant 0 : index
    %c0_32 = arith.constant 0 : index
    %60 = vector.load %arg3[%c2_30, %c0_31, %c0_32] : memref<3x32x32xf32, #tpu.memory_space<vmem>>, vector<1x32x32xf32>
    %61 = vector.shape_cast %60 : vector<1x32x32xf32> to vector<32x32xf32>
    %cst_33 = arith.constant dense<0.000000e+00> : vector<16x32xf32>
    %62 = tpu.matmul %59, %61, %cst_33 {dimension_numbers = #tpu.dot_dimension_numbers<[1], [0], [0], [1], [0, 0, 1, 1], [], []>} : vector<16x32xf32>, vector<32x32xf32>, vector<16x32xf32> -> vector<16x32xf32>
    %c3 = arith.constant 3 : index
    %c0_34 = arith.constant 0 : index
    %c0_35 = arith.constant 0 : index
    %63 = vector.load %arg4[%c3, %c0_34, %c0_35] : memref<4x1x32xf32, #tpu.memory_space<vmem>>, vector<1x1x32xf32>
    %64 = vector.shape_cast %63 : vector<1x1x32xf32> to vector<1x32xf32>
    %65 = vector.broadcast %64 : vector<1x32xf32> to vector<16x32xf32>
    %66 = arith.addf %62, %65 : vector<16x32xf32>
    %67 = arith.mulf %66, %66 : vector<16x32xf32>
    %68 = arith.mulf %66, %67 : vector<16x32xf32>
    %cst_36 = arith.constant 4.471500e-02 : f32
    %69 = vector.broadcast %cst_36 : f32 to vector<16x32xf32>
    %70 = arith.mulf %69, %68 : vector<16x32xf32>
    %71 = arith.addf %66, %70 : vector<16x32xf32>
    %cst_37 = arith.constant 0.797884583 : f32
    %72 = vector.broadcast %cst_37 : f32 to vector<16x32xf32>
    %73 = arith.mulf %72, %71 : vector<16x32xf32>
    %74 = math.tanh %73 : vector<16x32xf32>
    %cst_38 = arith.constant 1.000000e+00 : f32
    %75 = vector.broadcast %cst_38 : f32 to vector<16x32xf32>
    %76 = arith.addf %75, %74 : vector<16x32xf32>
    %cst_39 = arith.constant 5.000000e-01 : f32
    %77 = vector.broadcast %cst_39 : f32 to vector<16x32xf32>
    %78 = arith.mulf %77, %76 : vector<16x32xf32>
    %79 = arith.mulf %66, %78 : vector<16x32xf32>
    %c0_40 = arith.constant 0 : index
    %c0_41 = arith.constant 0 : index
    %80 = vector.load %arg5[%c0_40, %c0_41] : memref<32x32xf32, #tpu.memory_space<vmem>>, vector<32x32xf32>
    %cst_42 = arith.constant dense<0.000000e+00> : vector<16x32xf32>
    %81 = tpu.matmul %79, %80, %cst_42 {dimension_numbers = #tpu.dot_dimension_numbers<[1], [0], [0], [1], [0, 0, 1, 1], [], []>} : vector<16x32xf32>, vector<32x32xf32>, vector<16x32xf32> -> vector<16x32xf32>
    %c0_43 = arith.constant 0 : index
    %c0_44 = arith.constant 0 : index
    %82 = vector.load %arg6[%c0_43, %c0_44] : memref<1x32xf32, #tpu.memory_space<vmem>>, vector<1x32xf32>
    %83 = vector.broadcast %82 : vector<1x32xf32> to vector<16x32xf32>
    %84 = arith.addf %81, %83 : vector<16x32xf32>
    %85 = arith.mulf %84, %84 : vector<16x32xf32>
    %86 = arith.mulf %84, %85 : vector<16x32xf32>
    %cst_45 = arith.constant 4.471500e-02 : f32
    %87 = vector.broadcast %cst_45 : f32 to vector<16x32xf32>
    %88 = arith.mulf %87, %86 : vector<16x32xf32>
    %89 = arith.addf %84, %88 : vector<16x32xf32>
    %cst_46 = arith.constant 0.797884583 : f32
    %90 = vector.broadcast %cst_46 : f32 to vector<16x32xf32>
    %91 = arith.mulf %90, %89 : vector<16x32xf32>
    %92 = math.tanh %91 : vector<16x32xf32>
    %cst_47 = arith.constant 1.000000e+00 : f32
    %93 = vector.broadcast %cst_47 : f32 to vector<16x32xf32>
    %94 = arith.addf %93, %92 : vector<16x32xf32>
    %cst_48 = arith.constant 5.000000e-01 : f32
    %95 = vector.broadcast %cst_48 : f32 to vector<16x32xf32>
    %96 = arith.mulf %95, %94 : vector<16x32xf32>
    %97 = arith.mulf %84, %96 : vector<16x32xf32>
    %c0_49 = arith.constant 0 : index
    %c0_50 = arith.constant 0 : index
    %98 = vector.load %arg7[%c0_49, %c0_50] : memref<32x8xf32, #tpu.memory_space<vmem>>, vector<32x8xf32>
    %cst_51 = arith.constant dense<0.000000e+00> : vector<16x8xf32>
    %99 = tpu.matmul %97, %98, %cst_51 {dimension_numbers = #tpu.dot_dimension_numbers<[1], [0], [0], [1], [0, 0, 1, 1], [], []>} : vector<16x32xf32>, vector<32x8xf32>, vector<16x8xf32> -> vector<16x8xf32>
    %c0_52 = arith.constant 0 : index
    %c0_53 = arith.constant 0 : index
    %100 = vector.load %arg8[%c0_52, %c0_53] : memref<1x8xf32, #tpu.memory_space<vmem>>, vector<1x8xf32>
    %101 = vector.broadcast %100 : vector<1x8xf32> to vector<16x8xf32>
    %102 = arith.addf %99, %101 : vector<16x8xf32>
    %103 = tpu.iota {dimensions = array<i32: 1>} : vector<16x8xi32>
    %c7_i32 = arith.constant 7 : i32
    %104 = vector.broadcast %c7_i32 : i32 to vector<16x8xi32>
    %105 = arith.cmpi slt, %103, %104 : vector<16x8xi32>
    %cst_54 = arith.constant 0.000000e+00 : f32
    %106 = vector.broadcast %cst_54 : f32 to vector<16x8xf32>
    %107 = arith.select %105, %0, %106 : vector<16x8xi1>, vector<16x8xf32>
    %108 = arith.addf %102, %107 : vector<16x8xf32>
    %c0_55 = arith.constant 0 : index
    %c0_56 = arith.constant 0 : index
    %109 = vector.load %arg9[%c0_55, %c0_56] : memref<16x8xf32, #tpu.memory_space<vmem>>, vector<16x8xf32>
    tpu.vector_store %arg9[%c0_55, %c0_56], %108 {strides = array<i32>} : memref<16x8xf32, #tpu.memory_space<vmem>>, vector<16x8xf32>,
    return
  }
  func.func @transform_0(%arg0: i32) -> (i32, i32) {
    %c0_i32 = arith.constant 0 : i32
    %c0_i32_0 = arith.constant 0 : i32
    return %arg0, %c0_i32 : i32, i32
  }
  func.func @transform_1(%arg0: i32) -> (i32, i32) {
    %c0_i32 = arith.constant 0 : i32
    %c0_i32_0 = arith.constant 0 : i32
    %c0_i32_1 = arith.constant 0 : i32
    return %c0_i32, %c0_i32_0 : i32, i32
  }
  func.func @transform_2(%arg0: i32) -> (i32, i32, i32) {
    %c0_i32 = arith.constant 0 : i32
    %c0_i32_0 = arith.constant 0 : i32
    %c0_i32_1 = arith.constant 0 : i32
    %c0_i32_2 = arith.constant 0 : i32
    return %c0_i32, %c0_i32_0, %c0_i32_1 : i32, i32, i32
  }
  func.func @transform_3(%arg0: i32) -> (i32, i32, i32) {
    %c0_i32 = arith.constant 0 : i32
    %c0_i32_0 = arith.constant 0 : i32
    %c0_i32_1 = arith.constant 0 : i32
    %c0_i32_2 = arith.constant 0 : i32
    return %c0_i32, %c0_i32_0, %c0_i32_1 : i32, i32, i32
  }
  func.func @transform_4(%arg0: i32) -> (i32, i32) {
    %c0_i32 = arith.constant 0 : i32
    %c0_i32_0 = arith.constant 0 : i32
    %c0_i32_1 = arith.constant 0 : i32
    return %c0_i32, %c0_i32_0 : i32, i32
  }
  func.func @transform_5(%arg0: i32) -> (i32, i32) {
    %c0_i32 = arith.constant 0 : i32
    %c0_i32_0 = arith.constant 0 : i32
    %c0_i32_1 = arith.constant 0 : i32
    return %c0_i32, %c0_i32_0 : i32, i32
  }
  func.func @transform_6(%arg0: i32) -> (i32, i32) {
    %c0_i32 = arith.constant 0 : i32
    %c0_i32_0 = arith.constant 0 : i32
    %c0_i32_1 = arith.constant 0 : i32
    return %c0_i32, %c0_i32_0 : i32, i32
  }
  func.func @transform_7(%arg0: i32) -> (i32, i32) {
    %c0_i32 = arith.constant 0 : i32
    %c0_i32_0 = arith.constant 0 : i32
    %c0_i32_1 = arith.constant 0 : i32
    return %c0_i32, %c0_i32_0 : i32, i32
  }
  func.func @transform_8(%arg0: i32) -> (i32, i32) {
    %c0_i32 = arith.constant 0 : i32
    %c0_i32_0 = arith.constant 0 : i32
    return %arg0, %c0_i32 : i32, i32
  }
}

</mosaic_0001>

<bundles_post_ra>
// kernel: tpu_custom_call.1
= control target key start
LH: loop header
LB: loop body
LE: loop exit
PB: predicated region body
PF: predicated region fallthrough
CT: control target
= control target key end

     0   :  { %13 = vsyncpa [#allocation3], 0  ;;  %s1353_s27 = smov 0   ;;  %s1510_s0 = inlined_call_operand.vmem [shape: f32[64,8], index: 0, kind: input, shape index: {}]   ;;  %s1511_s1 = inlined_call_operand.vmem [shape: f32[8,32], index: 1, kind: input, shape index: {}]   ;;  %s1512_s2 = inlined_call_operand.vmem [shape: f32[3,32,32], index: 2, kind: input, shape index: {}]   ;;  %s1513_s3 = inlined_call_operand.vmem [shape: f32[4,1,32], index: 3, kind: input, shape index: {}]   ;;  %s1514_s4 = inlined_call_operand.hbm [shape: f32[32,32], index: 4, kind: input, shape index: {}]   ;;  %s1515_s5 = inlined_call_operand.vmem [shape: f32[1,32], index: 5, kind: input, shape index: {}]   ;;  %s1516_s6 = inlined_call_operand.vmem [shape: f32[32,8], index: 6, kind: input, shape index: {}]   ;;  %s1517_s7 = inlined_call_operand.vmem [shape: f32[1,8], index: 7, kind: input, shape index: {}]   ;;  %s1518_s8 = inlined_call_operand.vmem [shape: f32[64,8], index: 8, kind: output, shape index: {}]  }
   0x1 LB: > { %s1049_s28 = sadd.s32 4294967295, %s1303_s27   ;;  %p1051_p0 = scmp.ge.s32.totalorder %s1303_s27, 1  ;;  %s1303_s27 = sphi %s1353_s27, %s19_s27  }
   0x2   : > { %p223_p1 = scmp.lt.s32.totalorder %s1303_s27, 5  ;;  %s1305_s29 = smov [#allocation2]  }
   0x3   : > { %s244_s30 = sshll.u32 %s1305_s29, 4  ;;  %p1367_p3 = scmp.eq.s32.totalorder %s1049_s28, 0  ;;  %s245_s30 = int_to_ptr.vmem [resolvable:$true] %s244_s30 }
   0x4   : > { %p1361_p2 = pnand %p1051_p0, %p223_p1  ;;  %s1265_s14 = scalar_lea.hbm %s1514_s4, 512 }
   0x5   : > { %s1523_s10 = scalar_select %p1367_p3, 1, 0 }
   0x6   : > { %s1522_s9 = scalar_select %p1361_p2, 1, 0 }
   0x7   : > { %p1228_p4 = pneg %p1361_p2  ;;  %p1266_p6 = scmp.ne.s32.totalorder %s1514_s4, %s1265_s14 }
   0x8   : > { %p1272_p10 = scmp.lt.u32.totalorder %s1265_s14, %s1514_s4 }
   0x9   : > { %p1375_p5 = pnand %p1367_p3, %p1228_p4 }
   0xb   : > { %p1267_p7 = pneg %p1375_p5 }
   0xd   : > { %p1268_p8 = pnand %p1267_p7, %p1266_p6 }
   0xf   : > { %p1269_p9 = pneg %p1268_p8 }
  0x11   : > { %p1274_p11 = pnand %p1272_p10, %p1269_p9 }
  0x13   : > { %1277 = shalt.err (!%p1274_p11)
}
  0x14   : > { %s1278_s19 = scalar_lea.vmem %s245_s30, 512  ;;  %p1286_p1 = scmp.lt.s32.totalorder %s245_s30, %s245_s30 }
  0x15   : > { %p1279_p12 = scmp.ne.s32.totalorder %s245_s30, %s1278_s19  ;;  %p1287_p4 = scmp.lt.s32.totalorder %s1278_s19, %s1278_s19 }
  0x17   : > { %p1281_p13 = pnand %p1279_p12, %p1267_p7  ;;  %p1288_p3 = por %p1287_p4, %p1286_p1 }
  0x19   : > { %p1282_p0 = pneg %p1281_p13 }
  0x1b   : > { %p1289_p2 = pnand %p1288_p3, %p1282_p0 }
  0x1d   : > { %1292 = shalt.err (!%p1289_p2)
}
  0x1e   : > { %s1306_s20 = smov 128   ;;  %s1307_s21 = smov 8  }
  0x1f   : > { %1231 = dma.hbm_to_vmem [thread:$0]  (!%p1375_p5), %s1514_s4, 512, %s245_s30, [#allocation3], %s1306_s20, %s1306_s20, %s1307_s21  }
  0x20   : > { %p1525_p6 = scmp.ne.s32.totalorder %s1522_s9, 0 }
  0x21   : > { %p1526_p8 = scmp.ne.s32.totalorder (!%p1525_p6), %s1523_s10, 0 }
  0x22   : > { %278 = sbr.rel (%p1525_p6) target bundleno = 1483 (0x5cb), region = 52 }
  0x29   : > { %1298 = dma.done.wait (%p1526_p8), [#allocation3], 512  }
  0x2a   : > { %1300 = vsyncadd (%p1526_p8), [#allocation3], 4294966784  ;;  %s1056_s24 = sshll.u32 %s1049_s28, 1  ;;  %vm334_vm0 = vcmask 64512   ;;  %v326_v0 = vld [vmem:[%s1511_s1] sm:$0xff]  ;;  %v435_v4 = vld [vmem:[%s1512_s2 + $0x8] sm:$0xff] }
  0x2b   : > { %p313_p2 = scmp.lt.s32.totalorder %s1056_s24, 7  ;;  %1124 = vmatprep.subr.mxu0 %v326_v0  ;;  %v434_v3 = vld [vmem:[%s1512_s2] sm:$0xff]  ;;  %v436_v5 = vld [vmem:[%s1512_s2 + $0x10] sm:$0xff]  ;;  %v437_v7 = vld [vmem:[%s1512_s2 + $0x18] sm:$0xff]  ;;  %vm446_vm1 = vcmask 261120  }
  0x2c   : > { %1125 = vmatpush3.msra.mxu0 %v326_v0  ;;  %v1184_v6 = vpack.c.bf16 %v435_v4, %v434_v3  ;;  %v1188_v8 = vpack.c.bf16 %v437_v7, %v436_v5  ;;  %v1060_v9 = vld [vmem:[%s1513_s3] ss:$0 sm:$0xff]  ;;  %v1068_v33 = vld [vmem:[%s1512_s2 + $0x28] sm:$0xff]  ;;  %v1069_v35 = vld [vmem:[%s1512_s2 + $0x30] sm:$0xff] }
  0x2d   : > { %s1528_s24 = smov (!%p313_p2, %s1056_s24), 7  ;;  %v1067_v32 = vld [vmem:[%s1512_s2 + $0x20] sm:$0xff]  ;;  %v1070_v36 = vld [vmem:[%s1512_s2 + $0x38] sm:$0xff]  ;;  %v1076_v62 = vld [vmem:[%s1512_s2 + $0x48] sm:$0xff] }
  0x2e   : > { %s1057_s25 = sshll.u32 %s1528_s24, 3  ;;  %1185 = vmatprep.subr.bf16.mxu1 %v1184_v6  ;;  %v1192_v34 = vpack.c.bf16 %v1068_v33, %v1067_v32  ;;  %v1196_v37 = vpack.c.bf16 %v1070_v36, %v1069_v35  ;;  %v1064_v38 = vld [vmem:[%s1513_s3 + $0x1] ss:$0 sm:$0xff]  ;;  %v1077_v0 = vld [vmem:[%s1512_s2 + $0x50] sm:$0xff]  ;;  %v1078_v3 = vld [vmem:[%s1512_s2 + $0x58] sm:$0xff] }
  0x2f   : > { %s316_s30 = scalar_lea.vmem %s1510_s0, %s1057_s25  ;;  %1187 = vmatpush3.bf16.msra.mxu1 %v1184_v6  ;;  %v1075_v61 = vld [vmem:[%s1512_s2 + $0x40] sm:$0xff]  ;;  %v1204_v4 = vpack.c.bf16 %v1078_v3, %v1077_v0  ;;  %v773_v32 = vld [vmem:[#allocation2 + $0x18] sm:$0xff]  ;;  %s322_s18 = scalar_lea.vmem %s1518_s8, %s1057_s25 }
  0x30   : > { %v1414_v1 = vld [vmem:[%s316_s30] sm:$0xff]  ;;  %v1416_v2 = vld [vmem:[%s316_s30 + $0x8] sm:$0xff]  ;;  %1189 = vmatprep.subr.bf16.mxu1 %v1188_v8  ;;  %1193 = vmatprep.subr.bf16.mxu0 %v1192_v34  ;;  %v1200_v63 = vpack.c.bf16 %v1076_v62, %v1075_v61  ;;  %v883_v61 = vld [vmem:[%s1516_s6 + $0x18] sm:$0xff] }
  0x31   : > { %1126 = vmatprep.mubr.msk.f32.mxu0 %vm334_vm0, %v1414_v1  ;;  %v1072_v5 = vld [vmem:[%s1513_s3 + $0x2] ss:$0 sm:$0xff] }
  0x32   : > { %1127 = vmatmul.mubr.msk.f32.vlgmr.msra.gmra.mrb[0].mxu0 %vm334_vm0, %v1416_v2 }
  0x33   : > { %1191 = vmatpush3.bf16.msra.mxu1 %v1188_v8  ;;  %1195 = vmatpush3.bf16.msra.mxu0 %v1192_v34  ;;  %v1080_v34 = vld [vmem:[%s1513_s3 + $0x3] ss:$0 sm:$0xff] }
  0x34   : > { %1197 = vmatprep.subr.bf16.mxu0 %v1196_v37  ;;  %1201 = vmatprep.subr.bf16.mxu1 %v1200_v63 }
  0x37   : > { %1199 = vmatpush3.bf16.msra.mxu0 %v1196_v37 }
 0x105   : > { %v1128_v10 = vpop.f32.mrb[0].mxu0 }
 0x106   : > { %v413_v11 = vadd.f32 %v1128_v10, %v1060_v9  ;;  %v407_v12 = vpop.f32.mrb[1].mxu0 }
 0x107   : > { %v408_v13 = vadd.f32 %v1060_v9, %v407_v12 }
 0x108   : > { %v417_v14 = vmul.f32 %v413_v11, %v413_v11 }
 0x109   : > { %v416_v15 = vmul.f32 %v408_v13, %v408_v13 }
 0x10a   : > { %v419_v16 = vmul.f32 %v417_v14, %v413_v11 }
 0x10b   : > { %v418_v17 = vmul.f32 %v416_v15, %v408_v13 }
 0x10c   : > { %v421_v18 = vmul.f32 0.044715, %v419_v16 }
 0x10d   : > { %v420_v19 = vmul.f32 0.044715, %v418_v17 }
 0x10e   : > { %v423_v20 = vadd.f32 %v421_v18, %v413_v11 }
 0x10f   : > { %v422_v21 = vadd.f32 %v420_v19, %v408_v13 }
 0x110   : > { %v425_v22 = vmul.f32 0.7978846, %v423_v20 }
 0x111   : > { %v424_v23 = vmul.f32 0.7978846, %v422_v21 }
 0x112   : > { %1245 = vtanh.f32 %v425_v22 }
 0x113   : > { %1247 = vtanh.f32 %v424_v23 }
 0x11c   : > { %v1246_v24 = vpop.eup %1245 }
 0x11d   : > { %v1248_v25 = vpop.eup %1247  ;;  %v429_v26 = vadd.f32 1.0, %v1246_v24 }
 0x11e   : > { %v428_v27 = vadd.f32 1.0, %v1248_v25 }
 0x11f   : > { %v431_v28 = vmul.f32 0.5, %v429_v26 }
 0x120   : > { %v430_v29 = vmul.f32 0.5, %v428_v27 }
 0x121   : > { %v433_v31 = vmul.f32 %v431_v28, %v413_v11  ;;  %v770_v28 = vld [vmem:[#allocation2] sm:$0xff] }
 0x122   : > { %v432_v30 = vmul.f32 %v430_v29, %v408_v13  ;;  %v771_v29 = vld [vmem:[#allocation2 + $0x8] sm:$0xff] }
 0x124   : > { %1137 = vmatprep.mubr.msk.f32.mxu1 %vm446_vm1, %v432_v30  ;;  %v1208_v30 = vpack.c.bf16 %v771_v29, %v770_v28 }
 0x125   : > { %1138 = vmatmul.mubr.msk.f32.vlgmr.msra.gmra.mrb[0].mxu1 %vm446_vm1, %v433_v31  ;;  %v772_v31 = vld [vmem:[#allocation2 + $0x10] sm:$0xff] }
 0x126   : > { %1203 = vmatpush3.bf16.msra.mxu1 %v1200_v63  ;;  %1209 = vmatprep.subr.bf16.mxu0 %v1208_v30  ;;  %v1212_v33 = vpack.c.bf16 %v773_v32, %v772_v31  ;;  %v1083_v63 = vld [vmem:[%s1515_s5] ss:$0 sm:$0xff] }
 0x127   : > { %1205 = vmatprep.subr.bf16.mxu1 %v1204_v4 }
 0x12a   : > { %1207 = vmatpush3.bf16.msra.mxu1 %v1204_v4 }
 0x1f8   : > { %v1139_v39 = vpop.f32.mrb[0].mxu1 }
 0x1f9   : > { %v525_v40 = vadd.f32 %v1139_v39, %v1064_v38  ;;  %v519_v41 = vpop.f32.mrb[1].mxu1 }
 0x1fa   : > { %v520_v42 = vadd.f32 %v1064_v38, %v519_v41 }
 0x1fb   : > { %v529_v43 = vmul.f32 %v525_v40, %v525_v40 }
 0x1fc   : > { %v528_v44 = vmul.f32 %v520_v42, %v520_v42 }
 0x1fd   : > { %v531_v45 = vmul.f32 %v529_v43, %v525_v40 }
 0x1fe   : > { %v530_v46 = vmul.f32 %v528_v44, %v520_v42 }
 0x1ff   : > { %v533_v47 = vmul.f32 0.044715, %v531_v45 }
 0x200   : > { %v532_v48 = vmul.f32 0.044715, %v530_v46 }
 0x201   : > { %v535_v49 = vadd.f32 %v533_v47, %v525_v40 }
 0x202   : > { %v534_v50 = vadd.f32 %v532_v48, %v520_v42 }
 0x203   : > { %v537_v51 = vmul.f32 0.7978846, %v535_v49 }
 0x204   : > { %v536_v52 = vmul.f32 0.7978846, %v534_v50 }
 0x205   : > { %1249 = vtanh.f32 %v537_v51 }
 0x206   : > { %1251 = vtanh.f32 %v536_v52 }
 0x20f   : > { %v1250_v53 = vpop.eup %1249 }
 0x210   : > { %v1252_v54 = vpop.eup %1251  ;;  %v541_v55 = vadd.f32 1.0, %v1250_v53 }
 0x211   : > { %v540_v56 = vadd.f32 1.0, %v1252_v54 }
 0x212   : > { %v543_v57 = vmul.f32 0.5, %v541_v55 }
 0x213   : > { %v542_v58 = vmul.f32 0.5, %v540_v56 }
 0x214   : > { %v545_v60 = vmul.f32 %v543_v57, %v525_v40  ;;  %v880_v57 = vld [vmem:[%s1516_s6] sm:$0xff] }
 0x215   : > { %v544_v59 = vmul.f32 %v542_v58, %v520_v42  ;;  %v881_v58 = vld [vmem:[%s1516_s6 + $0x8] sm:$0xff] }
 0x217   : > { %1148 = vmatprep.mubr.msk.f32.mxu0 %vm446_vm1, %v544_v59  ;;  %v1216_v59 = vpack.c.bf16 %v881_v58, %v880_v57 }
 0x218   : > { %1149 = vmatmul.mubr.msk.f32.vlgmr.msra.gmra.mrb[2].mxu0 %vm446_vm1, %v545_v60  ;;  %v882_v60 = vld [vmem:[%s1516_s6 + $0x10] sm:$0xff] }
 0x219   : > { %1211 = vmatpush3.bf16.msra.mxu0 %v1208_v30  ;;  %1217 = vmatprep.subr.bf16.mxu1 %v1216_v59  ;;  %v1220_v62 = vpack.c.bf16 %v883_v61, %v882_v60 }
 0x21a   : > { %1213 = vmatprep.subr.bf16.mxu0 %v1212_v33 }
 0x21d   : > { %1215 = vmatpush3.bf16.msra.mxu0 %v1212_v33 }
 0x2eb   : > { %v1150_v6 = vpop.f32.mrb[2].mxu0 }
 0x2ec   : > { %v637_v7 = vadd.f32 %v1150_v6, %v1072_v5  ;;  %v631_v8 = vpop.f32.mrb[3].mxu0 }
 0x2ed   : > { %v632_v9 = vadd.f32 %v1072_v5, %v631_v8 }
 0x2ee   : > { %v641_v10 = vmul.f32 %v637_v7, %v637_v7 }
 0x2ef   : > { %v640_v11 = vmul.f32 %v632_v9, %v632_v9 }
 0x2f0   : > { %v643_v12 = vmul.f32 %v641_v10, %v637_v7 }
 0x2f1   : > { %v642_v13 = vmul.f32 %v640_v11, %v632_v9 }
 0x2f2   : > { %v645_v14 = vmul.f32 0.044715, %v643_v12 }
 0x2f3   : > { %v644_v15 = vmul.f32 0.044715, %v642_v13 }
 0x2f4   : > { %v647_v16 = vadd.f32 %v645_v14, %v637_v7 }
 0x2f5   : > { %v646_v17 = vadd.f32 %v644_v15, %v632_v9 }
 0x2f6   : > { %v649_v18 = vmul.f32 0.7978846, %v647_v16 }
 0x2f7   : > { %v648_v19 = vmul.f32 0.7978846, %v646_v17 }
 0x2f8   : > { %1253 = vtanh.f32 %v649_v18 }
 0x2f9   : > { %1255 = vtanh.f32 %v648_v19 }
 0x302   : > { %v1254_v20 = vpop.eup %1253 }
 0x303   : > { %v1256_v21 = vpop.eup %1255  ;;  %v653_v22 = vadd.f32 1.0, %v1254_v20 }
 0x304   : > { %v652_v23 = vadd.f32 1.0, %v1256_v21 }
 0x305   : > { %v655_v24 = vmul.f32 0.5, %v653_v22 }
 0x306   : > { %v654_v25 = vmul.f32 0.5, %v652_v23 }
 0x307   : > { %v657_v27 = vmul.f32 %v655_v24, %v637_v7  ;;  %v972_v24 = vlaneseq }
 0x308   : > { %v656_v26 = vmul.f32 %v654_v25, %v632_v9 }
 0x309   : > { %v973_v25 = vand.u32 127, %v972_v24 }
 0x30a   : > { %1159 = vmatprep.mubr.msk.f32.mxu1 %vm446_vm1, %v656_v26  ;;  %v1086_v26 = vld [vmem:[%s1517_s7] ss:$0 sm:$0xff] }
 0x30b   : > { %1160 = vmatmul.mubr.msk.f32.vlgmr.msra.gmra.mrb[2].mxu1 %vm446_vm1, %v657_v27  ;;  %vm974_vm2 = vcmp.lt.s32.totalorder %v973_v25, 7 }
 0x30c   : > { %1219 = vmatpush3.bf16.msra.mxu1 %v1216_v59  ;;  %v975_v28 = vsel %vm974_vm2, %v1414_v1, 0.0  ;;  %v976_v31 = vsel %vm974_vm2, %v1416_v2, 0.0 }
 0x30d   : > { %1221 = vmatprep.subr.bf16.mxu1 %v1220_v62 }
 0x310   : > { %1223 = vmatpush3.bf16.msra.mxu1 %v1220_v62 }
 0x3de   : > { %v1161_v35 = vpop.f32.mrb[2].mxu1 }
 0x3df   : > { %v749_v36 = vadd.f32 %v1161_v35, %v1080_v34  ;;  %v743_v37 = vpop.f32.mrb[3].mxu1 }
 0x3e0   : > { %v744_v38 = vadd.f32 %v1080_v34, %v743_v37 }
 0x3e1   : > { %v753_v39 = vmul.f32 %v749_v36, %v749_v36 }
 0x3e2   : > { %v752_v40 = vmul.f32 %v744_v38, %v744_v38 }
 0x3e3   : > { %v755_v41 = vmul.f32 %v753_v39, %v749_v36 }
 0x3e4   : > { %v754_v42 = vmul.f32 %v752_v40, %v744_v38 }
 0x3e5   : > { %v757_v43 = vmul.f32 0.044715, %v755_v41 }
 0x3e6   : > { %v756_v44 = vmul.f32 0.044715, %v754_v42 }
 0x3e7   : > { %v759_v45 = vadd.f32 %v757_v43, %v749_v36 }
 0x3e8   : > { %v758_v46 = vadd.f32 %v756_v44, %v744_v38 }
 0x3e9   : > { %v761_v47 = vmul.f32 0.7978846, %v759_v45 }
 0x3ea   : > { %v760_v48 = vmul.f32 0.7978846, %v758_v46 }
 0x3eb   : > { %1257 = vtanh.f32 %v761_v47 }
 0x3ec   : > { %1259 = vtanh.f32 %v760_v48 }
 0x3f5   : > { %v1258_v49 = vpop.eup %1257 }
 0x3f6   : > { %v1260_v50 = vpop.eup %1259  ;;  %v765_v51 = vadd.f32 1.0, %v1258_v49 }
 0x3f7   : > { %v764_v52 = vadd.f32 1.0, %v1260_v50 }
 0x3f8   : > { %v767_v53 = vmul.f32 0.5, %v765_v51 }
 0x3f9   : > { %v766_v54 = vmul.f32 0.5, %v764_v52 }
 0x3fa   : > { %v769_v56 = vmul.f32 %v767_v53, %v749_v36 }
 0x3fb   : > { %v768_v55 = vmul.f32 %v766_v54, %v744_v38 }
 0x3fd   : > { %1170 = vmatprep.mubr.msk.f32.mxu0 %vm446_vm1, %v768_v55 }
 0x3fe   : > { %1171 = vmatmul.mubr.msk.f32.vlgmr.msra.gmra.mrb[4].mxu0 %vm446_vm1, %v769_v56 }
 0x4d1   : > { %v1172_v0 = vpop.f32.mrb[4].mxu0 }
 0x4d2   : > { %v859_v3 = vadd.f32 %v1172_v0, %v1083_v63  ;;  %v853_v4 = vpop.f32.mrb[5].mxu0 }
 0x4d3   : > { %v854_v5 = vadd.f32 %v1083_v63, %v853_v4 }
 0x4d4   : > { %v863_v6 = vmul.f32 %v859_v3, %v859_v3 }
 0x4d5   : > { %v862_v7 = vmul.f32 %v854_v5, %v854_v5 }
 0x4d6   : > { %v865_v8 = vmul.f32 %v863_v6, %v859_v3 }
 0x4d7   : > { %v864_v9 = vmul.f32 %v862_v7, %v854_v5 }
 0x4d8   : > { %v867_v10 = vmul.f32 0.044715, %v865_v8 }
 0x4d9   : > { %v866_v11 = vmul.f32 0.044715, %v864_v9 }
 0x4da   : > { %v869_v12 = vadd.f32 %v867_v10, %v859_v3 }
 0x4db   : > { %v868_v13 = vadd.f32 %v866_v11, %v854_v5 }
 0x4dc   : > { %v871_v14 = vmul.f32 0.7978846, %v869_v12 }
 0x4dd   : > { %v870_v15 = vmul.f32 0.7978846, %v868_v13 }
 0x4de   : > { %1261 = vtanh.f32 %v871_v14 }
 0x4df   : > { %1263 = vtanh.f32 %v870_v15 }
 0x4e8   : > { %v1262_v16 = vpop.eup %1261 }
 0x4e9   : > { %v1264_v17 = vpop.eup %1263  ;;  %v875_v18 = vadd.f32 1.0, %v1262_v16 }
 0x4ea   : > { %v874_v19 = vadd.f32 1.0, %v1264_v17 }
 0x4eb   : > { %v877_v20 = vmul.f32 0.5, %v875_v18 }
 0x4ec   : > { %v876_v21 = vmul.f32 0.5, %v874_v19 }
 0x4ed   : > { %v879_v23 = vmul.f32 %v877_v20, %v859_v3 }
 0x4ee   : > { %v878_v22 = vmul.f32 %v876_v21, %v854_v5 }
 0x4f0   : > { %1181 = vmatprep.mubr.msk.f32.mxu1 %vm446_vm1, %v878_v22 }
 0x4f1   : > { %1182 = vmatmul.mubr.msk.f32.vlgmr.msra.gmra.mrb[4].mxu1 %vm446_vm1, %v879_v23 }
 0x5c4   : > { %v1183_v27 = vpop.f32.mrb[4].mxu1 }
 0x5c5   : > { %v969_v29 = vadd.f32 %v1183_v27, %v1086_v26  ;;  %v963_v30 = vpop.f32.mrb[5].mxu1 }
 0x5c6   : > { %v964_v32 = vadd.f32 %v1086_v26, %v963_v30 }
 0x5c7   : > { %v978_v34 = vadd.f32 %v976_v31, %v969_v29 }
 0x5c8   : > { %v977_v33 = vadd.f32 %v975_v28, %v964_v32 }
 0x5c9   : > { %980 = vst.msk [vmem:[%s322_s18 + $0x8] sm:$0xff] %vm334_vm0, %v978_v34 }
 0x5ca   : > { %979 = vst.msk [vmem:[%s322_s18] sm:$0xff] %vm334_vm0, %v977_v33 }
 0x5cb PF: > { %s19_s27 = sadd.s32 1, %s1303_s27  }
 0x5cc   : > { %p16_p3 = scmp.ge.s32.totalorder %s19_s27, 6  }
 0x5ce   :  { %18 = sbr.rel (!%p16_p3) target bundleno = 1 (0x1), region = 92 }
 0x5d5   :  { %1003 = vsyncpa [#allocation3], 1 }
 0x5d6   :  { %1005 = vsyncpa [#allocation3 + $0x1], 1 }

</bundles_post_ra>
